<compile_context>
chip_gen: v6e
topology: v6e:2x2x1
jax: 0.10.0
libtpu: 0.0.40
codegen_flags: <defaults>
</compile_context>

<pallas_src>
import functools
import math

import jax
import jax.numpy as jnp
from jax import lax
from jax.experimental import pallas as pl
from jax.experimental.pallas import tpu as pltpu


# Finite "minus infinity": keeps exp() NaN-free even for fully-masked rows of a
# diagonal KV tile once the query axis is tiled.
_NEG_INF = -1.0e30


@functools.lru_cache(maxsize=1)
def _vmem_limit_bytes():
    """Per-generation scoped-VMEM budget: ~3/4 of physical.

    v5e/v6e (128 MiB physical) -> 96 MiB; v7x (64 MiB physical) -> 48 MiB.
    Falls back to a conservative 32 MiB if the device query is unavailable.
    """
    default = 32 * 1024 * 1024
    try:
        cap = int(pltpu.get_tpu_info().vmem_capacity_bytes)
    except Exception:
        return default
    return int(min(cap * 3 // 4, 96 * 1024 * 1024))


def _pick_tile(dim, preferred):
    """Largest power-of-two tile <= preferred (and >= 128) dividing dim, else dim."""
    t = preferred
    while t >= 128:
        if dim % t == 0:
            return t
        t //= 2
    return dim


# --------------------- Qwen2RotaryEmbedding (the spec) ---------------------- #

def _rope_cos_sin_kernel(pos_ref, inv_ref, cos_ref, sin_ref, *, scaling):
    pos = pos_ref[0]                       # (tT, 1) float32 positions
    inv = inv_ref[...]                     # (1, hd//2) unique inv_freq
    freqs = pos * inv                      # (tT, hd//2) unique freqs only
    c = jnp.cos(freqs)                     # EUP work halved vs full-width emb
    s = jnp.sin(freqs)
    if scaling != 1.0:                     # static: skipped entirely for default rope
        c = c * scaling
        s = s * scaling
    # emb = cat(freqs, freqs): duplicate halves at store time (lane-dense store).
    cos_ref[0] = jnp.concatenate([c, c], axis=-1).astype(cos_ref.dtype)
    sin_ref[0] = jnp.concatenate([s, s], axis=-1).astype(sin_ref.dtype)


def qwen2_rotary_embedding(position_ids, inv_freq, attention_scaling=1.0,
                           dtype=jnp.float32, t_tile=256):
    """position_ids: (B, T) int; inv_freq: (hd//2,) -> cos, sin of shape (B, T, hd).

    Callers whose positions are shared across batch should pass (1, T) and
    broadcast in JAX (avoids B-redundant transcendental work / HBM writes).
    """
    # TODO(synk): dynamic-NTK inv_freq recompute (_dynamic_frequency_update) is
    # host-side buffer/cache logic and stays outside the kernel.
    # TODO(synk): feed positions lane-dense (scalar-prefetch or (B,1,T)) once the
    # in-kernel row->column relayout is validated on the target Mosaic version.
    B, T = position_ids.shape
    half = int(inv_freq.shape[0])
    hd = half * 2
    tT = _pick_tile(T, t_tile)
    pos = position_ids.astype(jnp.float32).reshape(B, T, 1)
    inv2d = inv_freq.reshape(1, half).astype(jnp.float32)
    kernel = functools.partial(_rope_cos_sin_kernel, scaling=float(attention_scaling))
    cos, sin = pl.pallas_call(
        kernel,
        out_shape=(jax.ShapeDtypeStruct((B, T, hd), dtype),
                   jax.ShapeDtypeStruct((B, T, hd), dtype)),
        grid=(B, T // tT),
        in_specs=[
            pl.BlockSpec((1, tT, 1), lambda b, t: (b, t, 0)),
            pl.BlockSpec((1, half), lambda b, t: (0, 0)),
        ],
        out_specs=(
            pl.BlockSpec((1, tT, hd), lambda b, t: (b, t, 0)),
            pl.BlockSpec((1, tT, hd), lambda b, t: (b, t, 0)),
        ),
        compiler_params=pltpu.CompilerParams(
            dimension_semantics=("parallel", "parallel"),
            vmem_limit_bytes=_vmem_limit_bytes()),
    )(pos, inv2d)
    return cos, sin


# ------------------------- Tiled linear (matmul) ---------------------------- #

def _matmul_bias_kernel(x_ref, w_ref, b_ref, o_ref, acc_ref):
    @pl.when(pl.program_id(2) == 0)
    def _():
        acc_ref[...] = jnp.zeros_like(acc_ref)

    acc_ref[...] += jnp.dot(x_ref[...], w_ref[...],
                            preferred_element_type=jnp.float32)

    @pl.when(pl.program_id(2) == pl.num_programs(2) - 1)
    def _():
        o_ref[...] = (acc_ref[...] + b_ref[...]).astype(o_ref.dtype)


def _matmul_kernel(x_ref, w_ref, o_ref, acc_ref):
    @pl.when(pl.program_id(2) == 0)
    def _():
        acc_ref[...] = jnp.zeros_like(acc_ref)

    acc_ref[...] += jnp.dot(x_ref[...], w_ref[...],
                            preferred_element_type=jnp.float32)

    @pl.when(pl.program_id(2) == pl.num_programs(2) - 1)
    def _():
        o_ref[...] = acc_ref[...].astype(o_ref.dtype)


def pallas_linear(x2d, w, bias=None, *, tm=256, tn=256, tk=512):
    """x2d: (M, K); w: (K, N) already transposed; bias: (N,) or None -> (M, N)."""
    M, K = x2d.shape
    _, N = w.shape
    tm_ = _pick_tile(M, tm)
    pad_m = 0
    if tm_ > tm:
        # No power-of-two tile >=128 divides a large M: pad the rows instead of
        # letting the A tile / acc scratch grow to M-sized (VMEM blow-up on v7x).
        tm_ = tm
        pad_m = (-M) % tm_
        x2d = jnp.pad(x2d, ((0, pad_m), (0, 0)))
    Mp = M + pad_m
    # TODO(synk): same padding treatment for awkward K/N if non-128-multiple
    # weight shapes ever show up (Qwen2 dims are all 128-multiples).
    tn_, tk_ = _pick_tile(N, tn), _pick_tile(K, tk)
    grid = (Mp // tm_, N // tn_, K // tk_)
    cp = pltpu.CompilerParams(
        dimension_semantics=("parallel", "parallel", "arbitrary"),
        vmem_limit_bytes=_vmem_limit_bytes())
    scratch = [pltpu.VMEM((tm_, tn_), jnp.float32)]
    out_shape = jax.ShapeDtypeStruct((Mp, N), x2d.dtype)
    if bias is not None:
        out = pl.pallas_call(
            _matmul_bias_kernel,
            out_shape=out_shape,
            grid=grid,
            in_specs=[
                pl.BlockSpec((tm_, tk_), lambda i, j, kk: (i, kk)),
                pl.BlockSpec((tk_, tn_), lambda i, j, kk: (kk, j)),
                pl.BlockSpec((1, tn_), lambda i, j, kk: (0, j)),
            ],
            out_specs=pl.BlockSpec((tm_, tn_), lambda i, j, kk: (i, j)),
            scratch_shapes=scratch,
            compiler_params=cp,
        )(x2d, w, bias.reshape(1, N).astype(jnp.float32))
    else:
        out = pl.pallas_call(
            _matmul_kernel,
            out_shape=out_shape,
            grid=grid,
            in_specs=[
                pl.BlockSpec((tm_, tk_), lambda i, j, kk: (i, kk)),
                pl.BlockSpec((tk_, tn_), lambda i, j, kk: (kk, j)),
            ],
            out_specs=pl.BlockSpec((tm_, tn_), lambda i, j, kk: (i, j)),
            scratch_shapes=scratch,
            compiler_params=cp,
        )(x2d, w)
    return out[:M] if pad_m else out


# ------------- RoPE + causal GQA attention (flash, q- and kv-tiled) --------- #

def _attn_kernel(q_ref, k_ref, v_ref, cos_ref, sin_ref, o_ref,
                 qrot_ref, m_ref, l_ref, acc_ref, *, hd, n_rep, tq, tkv):
    # Grid = (B, Hkv, nq, nkv).  INVARIANT: the KV axis (3) must stay innermost
    # and sequential ("arbitrary"): qrot/m/l/acc scratch persists across j and is
    # re-initialised at j == 0 for every (batch, kv-head, q-tile).
    qi = pl.program_id(2)
    j = pl.program_id(3)
    half = hd // 2
    inv_scale = 1.0 / math.sqrt(hd)

    def rope(x, c, s_signed):
        # rotate_half via XLU roll (shift == hd/2 so direction is irrelevant);
        # the rotate_half sign is pre-folded into the sin operand by the wrapper.
        return x * c + pltpu.roll(x, shift=half, axis=1) * s_signed

    @pl.when(j == 0)
    def _init():
        m_ref[...] = jnp.full_like(m_ref, _NEG_INF)
        l_ref[...] = jnp.zeros_like(l_ref)
        acc_ref[...] = jnp.zeros_like(acc_ref)
        q0 = pl.multiple_of(qi * tq, tq)
        cos_q = cos_ref[pl.ds(q0, tq), :].astype(jnp.float32)        # (tq, hd)
        sin_q = sin_ref[pl.ds(q0, tq), :].astype(jnp.float32)
        # RoPE per grouped query head straight from the fused-QKV lane layout
        # (no (n_rep*tq, hd) cos/sin concat temps); 1/sqrt(hd) folded into Q.
        q_all = q_ref[0].astype(jnp.float32)                         # (tq, n_rep*hd)
        pieces = []
        for h in range(n_rep):
            q_h = q_all[:, h * hd:(h + 1) * hd]
            pieces.append(rope(q_h, cos_q, sin_q) * inv_scale)
        qrot_ref[...] = jnp.concatenate(pieces, axis=0)              # (n_rep*tq, hd)

    # Causal skip: KV tiles entirely in the future of this query tile do no work
    # (their DMA is also skipped because the K/V index_map clamps j).
    @pl.when(j * tkv < (qi + 1) * tq)
    def _update():
        k0 = pl.multiple_of(j * tkv, tkv)
        cos_k = cos_ref[pl.ds(k0, tkv), :].astype(jnp.float32)       # (tkv, hd)
        sin_k = sin_ref[pl.ds(k0, tkv), :].astype(jnp.float32)
        k_rot = rope(k_ref[0].astype(jnp.float32), cos_k, sin_k)     # (tkv, hd)
        v = v_ref[0]                                                 # (tkv, hd)

        # Scores: contract the last dims directly (no explicit K^T temp).
        s = lax.dot_general(qrot_ref[...], k_rot, (((1,), (1,)), ((), ())),
                            preferred_element_type=jnp.float32)      # (n_rep*tq, tkv)

        # Causal mask in global coordinates; finite -1e30 keeps exp() NaN-free.
        # TODO(synk): apply only on diagonal KV tiles (lax.cond) to drop the
        # per-step iota/select on fully-visible tiles.
        row = qi * tq + lax.broadcasted_iota(
            jnp.int32, (n_rep, tq, tkv), 1).reshape(n_rep * tq, tkv)
        col = j * tkv + lax.broadcasted_iota(jnp.int32, (n_rep * tq, tkv), 1)
        s = jnp.where(col > row, _NEG_INF, s)

        # Online-softmax (flash) update: no (T, T) score materialisation.
        m_prev = m_ref[...]
        m_new = jnp.maximum(m_prev, jnp.max(s, axis=-1, keepdims=True))
        alpha = jnp.exp(m_prev - m_new)
        # TODO(synk): on v6e/v7x cast (s - m_new) to bf16 before exp for EUP relief.
        p = jnp.exp(s - m_new)
        l_ref[...] = alpha * l_ref[...] + jnp.sum(p, axis=-1, keepdims=True)
        acc_ref[...] = alpha * acc_ref[...] + jnp.dot(
            p.astype(v.dtype), v, preferred_element_type=jnp.float32)
        m_ref[...] = m_new

    @pl.when(j == pl.num_programs(3) - 1)
    def _finalize():
        # TODO(synk): pl.reciprocal(approx=True) for the bf16 production path.
        out = acc_ref[...] * pl.reciprocal(l_ref[...], approx=False)
        # Write the output directly in the (B, T, Hq*hd) activation layout.
        o_ref[0] = jnp.concatenate(
            [out[h * tq:(h + 1) * tq, :] for h in range(n_rep)],
            axis=-1).astype(o_ref.dtype)


def pallas_flash_gqa_attention(qkv, cos, sin_signed, num_heads, num_kv_heads,
                               head_dim, *, q_tile=256, kv_tile=512):
    """qkv: (B, T, Hq*hd + 2*Hkv*hd) fused projection output (heads-last layout).
    cos / sin_signed: (T, hd), sign of rotate_half already folded into sin.
    Returns the attention output in (B, T, Hq*hd) layout (no head transpose)."""
    B, T, _ = qkv.shape
    Hq, Hkv, hd = num_heads, num_kv_heads, head_dim
    n_rep = Hq // Hkv
    tq = _pick_tile(T, q_tile)
    tkv = _pick_tile(T, kv_tile)
    nq, nkv = T // tq, T // tkv

    def kv_last(qi):
        # Last KV tile intersecting the causal window of query tile qi; beyond it
        # the index map repeats (DMA skipped) and the kernel skips compute.
        return ((qi + 1) * tq - 1) // tkv

    kernel = functools.partial(_attn_kernel, hd=hd, n_rep=n_rep, tq=tq, tkv=tkv)
    return pl.pallas_call(
        kernel,
        out_shape=jax.ShapeDtypeStruct((B, T, Hq * hd), qkv.dtype),
        grid=(B, Hkv, nq, nkv),
        in_specs=[
            # q / k / v all read straight out of the fused QKV activation; the
            # lane block index selects the head group (no HBM head transposes).
            pl.BlockSpec((1, tq, n_rep * hd), lambda b, g, qi, j: (b, qi, g)),
            pl.BlockSpec((1, tkv, hd),
                         lambda b, g, qi, j: (b, jnp.minimum(j, kv_last(qi)), Hq + g)),
            pl.BlockSpec((1, tkv, hd),
                         lambda b, g, qi, j: (b, jnp.minimum(j, kv_last(qi)),
                                              Hq + Hkv + g)),
            # Single resident cos / signed-sin copy, sliced in-kernel for Q and K.
            pl.BlockSpec((T, hd), lambda b, g, qi, j: (0, 0)),
            pl.BlockSpec((T, hd), lambda b, g, qi, j: (0, 0)),
        ],
        out_specs=pl.BlockSpec((1, tq, n_rep * hd), lambda b, g, qi, j: (b, qi, g)),
        scratch_shapes=[
            pltpu.VMEM((n_rep * tq, hd), jnp.float32),   # rotated+scaled Q
            pltpu.VMEM((n_rep * tq, 1), jnp.float32),    # running max m
            pltpu.VMEM((n_rep * tq, 1), jnp.float32),    # running denom l
            pltpu.VMEM((n_rep * tq, hd), jnp.float32),   # output accumulator
        ],
        compiler_params=pltpu.CompilerParams(
            dimension_semantics=("parallel", "parallel", "parallel", "arbitrary"),
            vmem_limit_bytes=_vmem_limit_bytes()),
    )(qkv, qkv, qkv, cos, sin_signed)


# ------------------------------ Module wrapper ------------------------------ #

def prepare_attention_params(params):
    """One-time weight prep (hoisted out of the per-call path): fuse QKV and
    store all weights pre-transposed as (K, N)."""
    w_qkv = jnp.concatenate([params["wq"], params["wk"], params["wv"]], axis=0)
    return {
        "w_qkv_t": jnp.transpose(w_qkv),                                     # (C, Nq+2Nkv)
        "b_qkv": jnp.concatenate([params["bq"], params["bk"], params["bv"]]),
        "wo_t": jnp.transpose(params["wo"]),                                 # (C, C)
    }


def causal_self_attention(x, cos, sin, prepped, num_heads, num_kv_heads):
    """x: (B, T, C); cos/sin: (T, hd) as produced by qwen2_rotary_embedding."""
    B, T, C = x.shape
    hd = C // num_heads
    half = hd // 2

    # Pre-fold the rotate_half sign into sin ONCE (not per KV step in the kernel).
    sin_signed = jnp.concatenate([-sin[..., :half], sin[..., half:]], axis=-1)

    # Fused QKV projection: a single tiled matmul pass over x.
    qkv = pallas_linear(x.reshape(B * T, C), prepped["w_qkv_t"], prepped["b_qkv"])
    qkv = qkv.reshape(B, T, -1)

    # Flash GQA attention reads q/k/v straight from the fused layout and writes
    # (B, T, Hq*hd) directly -> no HBM head transposes on either side.
    y = pallas_flash_gqa_attention(qkv, cos, sin_signed, num_heads, num_kv_heads, hd)

    y = pallas_linear(y.reshape(B * T, C), prepped["wo_t"], None)   # o_proj (no bias)
    return y.reshape(B, T, C)


# --------------------------- Pure-JAX reference ----------------------------- #

def _rotate_half(u):
    h = u.shape[-1] // 2
    return jnp.concatenate([-u[..., h:], u[..., :h]], axis=-1)


def reference(x, cos, sin, params, num_heads, num_kv_heads):
    B, T, C = x.shape
    hd = C // num_heads
    n_rep = num_heads // num_kv_heads
    q = x @ params["wq"].T + params["bq"]
    k = x @ params["wk"].T + params["bk"]
    v = x @ params["wv"].T + params["bv"]
    q = q.reshape(B, T, num_heads, hd).transpose(0, 2, 1, 3)
    k = k.reshape(B, T, num_kv_heads, hd).transpose(0, 2, 1, 3)
    v = v.reshape(B, T, num_kv_heads, hd).transpose(0, 2, 1, 3)
    c = cos[None, None]
    s = sin[None, None]
    q = q * c + _rotate_half(q) * s
    k = k * c + _rotate_half(k) * s
    k = jnp.repeat(k, n_rep, axis=1)
    v = jnp.repeat(v, n_rep, axis=1)
    att = jnp.einsum("bhqd,bhkd->bhqk", q, k) / math.sqrt(hd)
    mask = jnp.triu(jnp.ones((T, T), dtype=bool), k=1)
    att = jnp.where(mask, -jnp.inf, att)
    att = jax.nn.softmax(att, axis=-1)
    y = jnp.einsum("bhqk,bhkd->bhqd", att, v)
    y = y.transpose(0, 2, 1, 3).reshape(B, T, C)
    return y @ params["wo"].T


# ---------------------------------- main ------------------------------------ #

if __name__ == "__main__":
    B, T = 2, 8
    num_heads, num_kv_heads = 4, 2
    hd = 128                       # real Qwen2 head_dim (keeps lanes dense)
    C = num_heads * hd

    key = jax.random.PRNGKey(0)
    kx, kq, kk_, kv_, ko, kbq, kbk, kbv = jax.random.split(key, 8)

    x = jax.random.normal(kx, (B, T, C), dtype=jnp.float32)

    scale = 0.02
    params = {
        "wq": scale * jax.random.normal(kq, (num_heads * hd, C), jnp.float32),
        "bq": scale * jax.random.normal(kbq, (num_heads * hd,), jnp.float32),
        "wk": scale * jax.random.normal(kk_, (num_kv_heads * hd, C), jnp.float32),
        "bk": scale * jax.random.normal(kbk, (num_kv_heads * hd,), jnp.float32),
        "wv": scale * jax.random.normal(kv_, (num_kv_heads * hd, C), jnp.float32),
        "bv": scale * jax.random.normal(kbv, (num_kv_heads * hd,), jnp.float32),
        "wo": scale * jax.random.normal(ko, (C, C), jnp.float32),
    }
    prepped = prepare_attention_params(params)     # one-time weight prep (hoisted)

    # --- Qwen2RotaryEmbedding forward (Pallas kernel) ---
    attention_scaling = 1.0        # default rope type
    inv_freq = 1.0 / (10000.0 ** (jnp.arange(0, hd, 2, dtype=jnp.float32) / hd))
    position_ids = jnp.arange(T, dtype=jnp.int32)[None, :]   # (1, T), shared across batch
    cos_b, sin_b = qwen2_rotary_embedding(position_ids, inv_freq, attention_scaling,
                                          dtype=x.dtype)
    cos_b, sin_b = jax.block_until_ready((cos_b, sin_b))
    cos, sin = cos_b[0], sin_b[0]                             # (T, hd)

    pos_f = position_ids[0].astype(jnp.float32)
    freqs = pos_f[:, None] * inv_freq[None, :]
    emb = jnp.concatenate([freqs, freqs], axis=-1)
    assert jnp.allclose(cos, jnp.cos(emb) * attention_scaling, atol=1e-5, rtol=1e-5)
    assert jnp.allclose(sin, jnp.sin(emb) * attention_scaling, atol=1e-5, rtol=1e-5)

    # --- Attention consumer (Pallas kernels) vs pure-JAX reference ---
    y = causal_self_attention(x, cos, sin, prepped, num_heads, num_kv_heads)
    y = jax.block_until_ready(y)

    y_ref = reference(x, cos, sin, params, num_heads, num_kv_heads)
    assert y.shape == (B, T, C)
    assert jnp.allclose(y, y_ref, atol=2e-4, rtol=2e-4), "mismatch vs reference"

    print("KERNEL_OK")
</pallas_src>

<mosaic_0001>
module attributes {stable_mosaic.version = 11 : i64} {
  func.func @_rope_cos_sin_kernel(%arg0: i32, %arg1: i32, %arg2: memref<1x8x1xf32, #tpu.memory_space<vmem>>, %arg3: memref<1x64xf32, #tpu.memory_space<vmem>>, %arg4: memref<1x8x128xf32, #tpu.memory_space<vmem>>, %arg5: memref<1x8x128xf32, #tpu.memory_space<vmem>>) attributes {dimension_semantics = [#tpu.dimension_semantics<parallel>, #tpu.dimension_semantics<parallel>], iteration_bounds = array<i64: 1, 1>, scalar_prefetch = 0 : i64, scratch_operands = 0 : i64, tpu.core_type = #tpu.core_type<tc>, window_params = [{transform_indices = @transform_0, window_bounds = array<i64: 1, 8, 1>}, {pipeline_mode = #tpu.pipeline_mode<synchronous>, transform_indices = @transform_1, window_bounds = array<i64: 1, 64>}, {transform_indices = @transform_2, window_bounds = array<i64: 1, 8, 128>}, {transform_indices = @transform_3, window_bounds = array<i64: 1, 8, 128>}]} {
    %c0 = arith.constant 0 : index
    %c0_0 = arith.constant 0 : index
    %c0_1 = arith.constant 0 : index
    %0 = vector.load %arg2[%c0, %c0_0, %c0_1] : memref<1x8x1xf32, #tpu.memory_space<vmem>>, vector<1x8x1xf32>
    %1 = vector.shape_cast %0 : vector<1x8x1xf32> to vector<8x1xf32>
    %c0_2 = arith.constant 0 : index
    %c0_3 = arith.constant 0 : index
    %2 = vector.load %arg3[%c0_2, %c0_3] : memref<1x64xf32, #tpu.memory_space<vmem>>, vector<1x64xf32>
    %3 = vector.broadcast %1 : vector<8x1xf32> to vector<8x64xf32>
    %4 = vector.broadcast %2 : vector<1x64xf32> to vector<8x64xf32>
    %5 = arith.mulf %3, %4 : vector<8x64xf32>
    %6 = math.cos %5 : vector<8x64xf32>
    %7 = math.sin %5 : vector<8x64xf32>
    %8 = tpu.concatenate %6, %6 in 1 : vector<8x64xf32>, vector<8x64xf32> -> vector<8x128xf32>
    %c0_4 = arith.constant 0 : index
    %c0_5 = arith.constant 0 : index
    %c0_6 = arith.constant 0 : index
    %9 = vector.load %arg4[%c0_4, %c0_5, %c0_6] : memref<1x8x128xf32, #tpu.memory_space<vmem>>, vector<1x8x128xf32>
    %10 = vector.shape_cast %9 : vector<1x8x128xf32> to vector<8x128xf32>
    %11 = vector.shape_cast %8 : vector<8x128xf32> to vector<1x8x128xf32>
    tpu.vector_store %arg4[%c0_4, %c0_5, %c0_6], %11 {strides = array<i32>} : memref<1x8x128xf32, #tpu.memory_space<vmem>>, vector<1x8x128xf32>,
    %12 = tpu.concatenate %7, %7 in 1 : vector<8x64xf32>, vector<8x64xf32> -> vector<8x128xf32>
    %c0_7 = arith.constant 0 : index
    %c0_8 = arith.constant 0 : index
    %c0_9 = arith.constant 0 : index
    %13 = vector.load %arg5[%c0_7, %c0_8, %c0_9] : memref<1x8x128xf32, #tpu.memory_space<vmem>>, vector<1x8x128xf32>
    %14 = vector.shape_cast %13 : vector<1x8x128xf32> to vector<8x128xf32>
    %15 = vector.shape_cast %12 : vector<8x128xf32> to vector<1x8x128xf32>
    tpu.vector_store %arg5[%c0_7, %c0_8, %c0_9], %15 {strides = array<i32>} : memref<1x8x128xf32, #tpu.memory_space<vmem>>, vector<1x8x128xf32>,
    return
  }
  func.func @transform_0(%arg0: i32, %arg1: i32) -> (i32, i32, i32) {
    %c0_i32 = arith.constant 0 : i32
    %c0_i32_0 = arith.constant 0 : i32
    return %arg0, %arg1, %c0_i32 : i32, i32, i32
  }
  func.func @transform_1(%arg0: i32, %arg1: i32) -> (i32, i32) {
    %c0_i32 = arith.constant 0 : i32
    %c0_i32_0 = arith.constant 0 : i32
    %c0_i32_1 = arith.constant 0 : i32
    return %c0_i32, %c0_i32_0 : i32, i32
  }
  func.func @transform_2(%arg0: i32, %arg1: i32) -> (i32, i32, i32) {
    %c0_i32 = arith.constant 0 : i32
    %c0_i32_0 = arith.constant 0 : i32
    return %arg0, %arg1, %c0_i32 : i32, i32, i32
  }
  func.func @transform_3(%arg0: i32, %arg1: i32) -> (i32, i32, i32) {
    %c0_i32 = arith.constant 0 : i32
    %c0_i32_0 = arith.constant 0 : i32
    return %arg0, %arg1, %c0_i32 : i32, i32, i32
  }
}

</mosaic_0001>

<bundles_post_ra>
// kernel: tpu_custom_call.1
= control target key start
LH: loop header
LB: loop body
LE: loop exit
PB: predicated region body
PF: predicated region fallthrough
CT: control target
= control target key end

     0   :  { %9 = vsyncpa [#allocation3], 0  ;;  %v349_v1 = vmov 0   ;;  %s412_s0 = inlined_call_operand.vmem [shape: f32[1,8,1], index: 0, kind: input, shape index: {}]   ;;  %s413_s1 = inlined_call_operand.vmem [shape: f32[1,64], index: 1, kind: input, shape index: {}]   ;;  %s414_s2 = inlined_call_operand.hbm [shape: f32[1,8,128], index: 2, kind: output, shape index: {0}]   ;;  %s415_s3 = inlined_call_operand.hbm [shape: f32[1,8,128], index: 3, kind: output, shape index: {1}]  }
   0x1   :  { %v15_v0 = vld [vmem:[%s412_s0] sm:$0xff]  ;;  %300 = vset.pattern.permute.xlu0 %v349_v1 }
   0x2   :  { %10 = vsyncpa [#allocation5], 0  ;;  %19 = vperm.xlu0 %300, %v15_v0   ;;  %v277_v2 = vld [vmem:[%s413_s1] ss:$0 sm:$0xff]  ;;  %v350_v16 = vmov 2102212464  }
   0x3   :  { %v351_v18 = vmov 920167782   ;;  %v352_v22 = vmov 1326507024   ;;  %v353_v24 = vmov 683565275  }
   0x4   :  { %v354_v26 = vmov 2475754826   ;;  %v355_v29 = vmov 2131351028   ;;  %s356_s0 = smov 64   ;;  %s357_s1 = smov [#allocation2]  }
   0x5   :  { %s255_s16 = sshll.u32 %s357_s1, 4  ;;  %s358_s17 = smov [#allocation4]   ;;  %s256_s16 = int_to_ptr.vmem [resolvable:$true] %s255_s16 }
   0x6   :  { %s265_s18 = sshll.u32 %s358_s17, 4  ;;  %s305_s19 = scalar_lea.vmem %s256_s16, 128  ;;  %s266_s18 = int_to_ptr.vmem [resolvable:$true] %s265_s18 }
   0x7   :  { %p306_p0 = scmp.ne.s32.totalorder %s256_s16, %s305_s19  ;;  %p310_p1 = scmp.lt.s32.totalorder %s256_s16, %s256_s16 }
   0x8   :  { %p311_p2 = scmp.lt.s32.totalorder %s305_s19, %s305_s19 }
   0xa   :  { %p312_p3 = por %p311_p2, %p310_p1 }
   0xc   :  { %p313_p4 = pnand %p312_p3, %p306_p0 }
  0x7d   :  { %v20_v3 = vpop.permute.xlu0 %19 }
  0x7e   :  { %v385_v4 = vmul.f32 %v277_v2, %v20_v3 }
  0x80   :  { %v32_v5 = vand.u32 2139095040, %v385_v4  ;;  %v29_v6 = vand.u32 2147483647, %v385_v4  ;;  %vm31_vm7 = vcmp.lt.s32.totalorder %v385_v4, 0  ;;  %vm121_vm15 = vweird.f32 %v385_v4 }
  0x82   :  { %v33_v7 = vshrl.u32 %v32_v5, 23  ;;  %v36_v9 = vand.u32 8388607, %v29_v6  ;;  %vm30_vm8 = vcmp.le.f32.partialorder %v29_v6, 0.7853982 }
  0x84   :  { %v278_v8 = vadd.s32 4294967169, %v33_v7  ;;  %v37_v12 = vor.u32 8388608, %v36_v9 }
  0x86   :  { %v39_v10 = vadd.s32 1, %v278_v8  ;;  %v77_v20 = vshll.u32 %v37_v12, 8 }
  0x88   :  { %vm40_vm0 = vcmp.gt.s32.totalorder %v39_v10, 0 }
  0x89   :  { %v41_v11 = vsel %vm40_vm0, %v39_v10, 0  ;;  %vm240_vm0 = vcmask 523264  }
  0x8a   :  { %v43_v13 = vand.u32 31, %v41_v11  ;;  %v42_v14 = vshrl.u32 %v41_v11, 5 }
  0x8c   :  { %v44_v15 = vsub.s32 32, %v43_v13  ;;  %v55_v17 = vshll.u32 %v350_v16, %v43_v13  ;;  %v58_v19 = vshll.u32 %v351_v18, %v43_v13  ;;  %v46_v25 = vshll.u32 %v353_v24, %v43_v13 }
  0x8d   :  { %v49_v28 = vshll.u32 %v354_v26, %v43_v13  ;;  %v52_v31 = vshll.u32 %v355_v29, %v43_v13  ;;  %vm64_vm1 = vcmp.lt.s32.totalorder %v42_v14, 4  ;;  %vm61_vm2 = vcmp.lt.s32.totalorder %v42_v14, 1 }
  0x8e   :  { %v56_v21 = vshrl.u32 %v351_v18, %v44_v15  ;;  %v59_v23 = vshrl.u32 %v352_v22, %v44_v15  ;;  %v47_v27 = vshrl.u32 %v354_v26, %v44_v15  ;;  %v50_v30 = vshrl.u32 %v355_v29, %v44_v15 }
  0x8f   :  { %v53_v32 = vshrl.u32 %v350_v16, %v44_v15  ;;  %v45_v36 = vshrl.u32 %v353_v24, %v44_v15  ;;  %vm62_vm3 = vcmp.lt.s32.totalorder %v42_v14, 2  ;;  %vm63_vm4 = vcmp.lt.s32.totalorder %v42_v14, 3 }
  0x90   :  { %v57_v33 = vor.u32 %v56_v21, %v55_v17  ;;  %v60_v34 = vor.u32 %v59_v23, %v58_v19  ;;  %v48_v35 = vor.u32 %v47_v27, %v46_v25  ;;  %v51_v37 = vor.u32 %v50_v30, %v49_v28 }
  0x91   :  { %v54_v38 = vor.u32 %v53_v32, %v52_v31 }
  0x92   :  { %v70_v39 = vsel %vm64_vm1, %v57_v33, 920167782  ;;  %v74_v40 = vsel %vm64_vm1, %v60_v34, 1326507024  ;;  %v69_v42 = vsel %vm61_vm2, %v48_v35, %v51_v37  ;;  %v65_v45 = vsel %vm61_vm2, %v45_v36, %v48_v35 }
  0x93   :  { %v66_v41 = vsel %vm64_vm1, %v54_v38, 2102212464  ;;  %v71_v43 = vsel %vm63_vm4, %v54_v38, %v70_v39  ;;  %v73_v44 = vsel %vm61_vm2, %v51_v37, %v54_v38  ;;  %v75_v48 = vsel %vm63_vm4, %v57_v33, %v74_v40 }
  0x94   :  { %v67_v46 = vsel %vm63_vm4, %v51_v37, %v66_v41  ;;  %v72_v47 = vsel %vm62_vm3, %v69_v42, %v71_v43  ;;  %v76_v49 = vsel %vm62_vm3, %v73_v44, %v75_v48 }
  0x95   :  { %v391_v50 = vmul.u32.u64.low %v77_v20, %v72_v47  ;;  %v392_v51 = vmul.u32.u64.high %v77_v20, %v72_v47, %v391_v50  ;;  %v394_v52 = vmul.u32.u64.low %v77_v20, %v76_v49  ;;  %v395_v53 = vmul.u32.u64.high %v77_v20, %v76_v49, %v394_v52 }
  0x96   :  { %v68_v54 = vsel %vm62_vm3, %v65_v45, %v67_v46 }
  0x97   :  { %v87_v55 = vadd.s32 1, %v392_v51  ;;  %v84_v56 = vmul.u32 %v77_v20, %v68_v54  ;;  %vm86_vm5 = vc.u32 %v395_v53, %v391_v50  ;;  %v85_v5 = vadd.s32 %v391_v50, %v395_v53 }
  0x99   :  { %v88_v57 = vsel %vm86_vm5, %v87_v55, %v392_v51 }
  0x9a   :  { %v89_v58 = vadd.s32 %v88_v57, %v84_v56 }
  0x9c   :  { %v90_v59 = vadd.s32 536870912, %v89_v58 }
  0x9e   :  { %v91_v60 = vshrl.u32 %v90_v59, 30 }
  0xa0   :  { %v92_v61 = vshll.u32 %v91_v60, 30  ;;  %v115_v19 = vsub.s32 4, %v91_v60 }
  0xa2   :  { %v93_v62 = vsub.s32 %v89_v58, %v92_v61  ;;  %v116_v22 = vsel %vm31_vm7, %v115_v19, %v91_v60 }
  0xa3   :  { %v118_v23 = vsel %vm30_vm8, 0, %v116_v22 }
  0xa4   :  { %v95_v63 = vsub.s32 0, %v93_v62  ;;  %v225_v24 = vadd.s32 3, %v118_v23  ;;  %v122_v26 = vand.u32 3, %v118_v23 }
  0xa6   :  { %v279_v0 = vmin.u32 %v95_v63, %v93_v62  ;;  %v226_v25 = vand.u32 3, %v225_v24  ;;  %vm127_vm10 = vcmp.eq.s32.totalorder %v122_v26, 2  ;;  %vm124_vm12 = vcmp.eq.s32.totalorder %v122_v26, 0 }
  0xa7   :  { %vm123_vm14 = vcmp.lt.s32.totalorder %v122_v26, 2 }
  0xa8   :  { %v97_v1 = vclz %v279_v0  ;;  %vm231_vm9 = vcmp.eq.s32.totalorder %v226_v25, 2  ;;  %vm228_vm11 = vcmp.eq.s32.totalorder %v226_v25, 0  ;;  %vm227_vm13 = vcmp.lt.s32.totalorder %v226_v25, 2 }
  0xaa   :  { %v280_v2 = vadd.s32 4294967294, %v97_v1 }
  0xac   :  { %vm281_vm6 = vcmp.lt.s32.totalorder %v280_v2, 0 }
  0xad   :  { %v100_v3 = vsel %vm281_vm6, 0, %v280_v2 }
  0xae   :  { %v101_v7 = vsub.s32 32, %v100_v3  ;;  %v105_v8 = vsub.s32 4294967266, %v100_v3  ;;  %v102_v9 = vshll.u32 %v93_v62, %v100_v3 }
  0xb0   :  { %v103_v10 = vshrl.u32 %v85_v5, %v101_v7  ;;  %v106_v11 = vadd.s32 127, %v105_v8 }
  0xb2   :  { %v104_v12 = vor.u32 %v103_v10, %v102_v9  ;;  %v107_v13 = vshll.u32 %v106_v11, 23 }
  0xb4   :  { %v108_v14 = vor.u32 4788187, %v107_v13  ;;  %v111_v16 = vcvt.s32.f32 %v104_v12 }
  0xb6   :  { %v109_v15 = vand.u32 2147483647, %v108_v14 }
  0xb8   :  { %v112_v17 = vmul.f32 %v111_v16, %v109_v15 }
  0xba   :  { %v113_v18 = vxor.u32 2147483648, %v112_v17 }
  0xbc   :  { %v114_v20 = vsel %vm31_vm7, %v113_v18, %v112_v17 }
  0xbd   :  { %v117_v21 = vsel %vm30_vm8, %v385_v4, %v114_v20 }
  0xbe   :  { %301 = vcosq.f32 %v117_v21 }
  0xbf   :  { %303 = vsinq.f32 %v117_v21 }
  0xcb   :  { %v302_v27 = vpop.eup %301 }
  0xcc   :  { %v304_v28 = vpop.eup %303  ;;  %v128_v29 = vxor.u32 2147483648, %v302_v27 }
  0xcd   :  { %v125_v30 = vxor.u32 2147483648, %v304_v28 }
  0xce   :  { %v233_v31 = vsel %vm231_vm9, %v128_v29, %v304_v28  ;;  %v129_v6 = vsel %vm127_vm10, %v128_v29, %v304_v28 }
  0xcf   :  { %v230_v32 = vsel %vm228_vm11, %v302_v27, %v125_v30  ;;  %v126_v33 = vsel %vm124_vm12, %v302_v27, %v125_v30 }
  0xd0   :  { %v234_v34 = vsel %vm227_vm13, %v230_v32, %v233_v31  ;;  %v130_v35 = vsel %vm123_vm14, %v126_v33, %v129_v6 }
  0xd1   :  { %v235_v36 = vsel %vm121_vm15, nan, %v234_v34  ;;  %v131_v37 = vsel %vm121_vm15, nan, %v130_v35 }
  0xd2   :  { %244 = vrot.lane.b32.xlu1 %v235_v36, %s356_s0  ;;  %237 = vrot.lane.b32.xlu0 %v131_v37, %s356_s0 }
 0x144   :  { %v245_v38 = vpop.permute.xlu1 %244  ;;  %v238_v39 = vpop.permute.xlu0 %237 }
 0x145   :  { %v247_v40 = vsel %vm240_vm0, %v235_v36, %v245_v38  ;;  %v241_v41 = vsel %vm240_vm0, %v131_v37, %v238_v39 }
 0x146   :  { %248 = vst [vmem:[#allocation4] sm:$0xff] %v247_v40  ;;  %242 = vst [vmem:[#allocation2] sm:$0xff] %v241_v41 }
 0x147   :  { %316 = shalt.err (!%p313_p4)
}
 0x148   :  { %258 = dma.vmem_to_hbm [thread:$0]  %s256_s16, 128, %s414_s2, [#allocation3]  }
 0x149   :  { %s325_s22 = scalar_lea.vmem %s266_s18, 128  ;;  %p330_p6 = scmp.lt.s32.totalorder %s266_s18, %s266_s18 }
 0x14a   :  { %p326_p5 = scmp.ne.s32.totalorder %s266_s18, %s325_s22  ;;  %p331_p7 = scmp.lt.s32.totalorder %s325_s22, %s325_s22 }
 0x14c   :  { %p332_p8 = por %p331_p7, %p330_p6 }
 0x14e   :  { %p333_p9 = pnand %p332_p8, %p326_p5 }
 0x150   :  { %336 = shalt.err (!%p333_p9)
}
 0x151   :  { %268 = dma.vmem_to_hbm [thread:$0]  %s266_s18, 128, %s415_s3, [#allocation5]  }
 0x152   :  { %345 = dma.done.wait [#allocation3], 128  }
 0x153   :  { %346 = vsyncadd [#allocation3], 4294967168 }
 0x154   :  { %347 = dma.done.wait [#allocation5], 128  }
 0x155   :  { %348 = vsyncadd [#allocation5], 4294967168 }
 0x156   :  { %275 = vsyncpa [#allocation3], 1 }
 0x157   :  { %276 = vsyncpa [#allocation5], 1 }

</bundles_post_ra>
